<compile_context>
chip_gen: v6e
topology: v6e:2x2x1
jax: 0.10.0
libtpu: 0.0.40
codegen_flags: <defaults>
</compile_context>

<pallas_src>
import functools

import jax
import jax.numpy as jnp
from jax import lax
from jax.experimental import pallas as pl
from jax.experimental.pallas import tpu as pltpu


_MASK = -1e30          # finite "minus infinity": exp(_MASK - finite) == 0, never NaN
_VMEM_CAP = 48 << 20   # stay well inside v7x's 64 MiB physical VMEM (v5e/v6e: 128 MiB)


def _round_up(v, m):
    return ((v + m - 1) // m) * m


def _cdiv(a, b):
    return (a + b - 1) // b


def _attn_pool_kernel(x_ref, wvu_ref, bvu_ref, wwt_ref,
                      m_out, s_out, acc_out,
                      m_scr, s_scr, acc_scr,
                      *, n_valid, d, tile_n, inner_steps, mask_tail):
    """One (split, tile) grid step of the streaming gated-attention pooling."""
    split = pl.program_id(0)
    j = pl.program_id(1)

    @pl.when(j == 0)
    def _():
        m_scr[...] = jnp.full_like(m_scr, _MASK)
        s_scr[...] = jnp.zeros_like(s_scr)
        acc_scr[...] = jnp.zeros_like(acc_scr)

    x = x_ref[...]                                                    # (tile_n, L)

    # Fused gate matmul: one MXU pass gives both the V and U branches.
    # Operands are bf16 when compute_dtype=bf16; accumulation is f32.
    h = jnp.dot(x, wvu_ref[...],
                preferred_element_type=jnp.float32) + bvu_ref[...]    # (tile_n, 2*d)
    a_v = jnp.tanh(h[:, :d])             # lane-aligned halves (d is a multiple of 128)
    a_u = jax.nn.sigmoid(h[:, d:])
    gate = a_v * a_u                                                  # f32 (tile_n, d)

    # Lane-major attention logits (K, tile_n): contract over the gate dim.
    logits = lax.dot_general(
        wwt_ref[...], gate.astype(wwt_ref.dtype),
        dimension_numbers=(((1,), (1,)), ((), ())),
        preferred_element_type=jnp.float32)                           # (K, tile_n)

    if mask_tail:
        # Only the final global tile can contain padded rows; this branch is compiled
        # out entirely (statically) when N is a multiple of the padded extent.
        blk = split * inner_steps + j
        col = lax.broadcasted_iota(jnp.int32, logits.shape, 1) + blk * tile_n
        logits = jnp.where(col < n_valid, logits, _MASK)

    # Online softmax over N with unnormalized weighted-sum accumulation (all f32).
    m_old = m_scr[...]                                                # (K, 1)
    m_new = jnp.maximum(m_old, jnp.max(logits, axis=1, keepdims=True))
    alpha = jnp.exp(m_old - m_new)                                    # (K, 1)
    e = jnp.exp(logits - m_new)                                       # (K, tile_n)
    s_scr[...] = alpha * s_scr[...] + jnp.sum(e, axis=1, keepdims=True)
    acc_scr[...] = alpha * acc_scr[...] + jnp.dot(
        e.astype(x.dtype), x, preferred_element_type=jnp.float32)     # (K, L)
    m_scr[...] = m_new

    @pl.when(j == inner_steps - 1)
    def _():
        m_out[...] = m_scr[...]
        s_out[...] = s_scr[...]
        acc_out[...] = acc_scr[...]


def _merge_classifier_kernel(m_ref, s_ref, acc_ref, wc_ref, bc_ref, out_ref,
                             *, num_splits):
    """Flash-style merge of per-split (m, s, acc) partials + linear classifier."""
    m_g = m_ref[0]                                                    # (K, 1)
    for t in range(1, num_splits):
        m_g = jnp.maximum(m_g, m_ref[t])
    den = jnp.zeros(m_ref.shape[1:], jnp.float32)                     # (K, 1)
    acc = jnp.zeros(acc_ref.shape[1:], jnp.float32)                   # (K, L)
    for t in range(num_splits):
        scale = jnp.exp(m_ref[t] - m_g)
        den = den + s_ref[t] * scale
        acc = acc + acc_ref[t] * scale
    afeat = acc / den                                                 # softmax(A)^T @ x
    pred = jnp.dot(afeat.astype(wc_ref.dtype), wc_ref[...],
                   preferred_element_type=jnp.float32) + bc_ref[...]
    out_ref[...] = pred.astype(out_ref.dtype)


def attention_with_classifier(x, params, *, compute_dtype=jnp.bfloat16,
                              num_splits=None, max_tile_rows=None, x_buffers=2):
    """Forward pass of Attention_with_Classifier.

    x: (N, L) bag of instances.  params: weights laid out as [in, out]
    ('wv','bv','wu','bu','ww','wc','bc'); 'bw' is ignored (softmax shift-invariance).
    """
    N, L = x.shape
    wv, bv = params['wv'], params['bv']     # (L, D), (1, D)
    wu, bu = params['wu'], params['bu']     # (L, D), (1, D)
    ww = params['ww']                       # (D, K)
    wc, bc = params['wc'], params['bc']     # (L, C), (1, C)
    D = wv.shape[1]
    K = ww.shape[1]
    C = wc.shape[1]

    # --- lane-aligned, fused gate weights -------------------------------------
    d_pad = _round_up(D, 128)               # both halves of h start on a 128-lane boundary
    pad_d = ((0, 0), (0, d_pad - D))
    wvu = jnp.concatenate([jnp.pad(wv, pad_d), jnp.pad(wu, pad_d)],
                          axis=1).astype(compute_dtype)               # (L, 2*Dp)
    bvu = jnp.concatenate([jnp.pad(bv, pad_d), jnp.pad(bu, pad_d)],
                          axis=1).astype(jnp.float32)                 # (1, 2*Dp), added in f32
    wwt = jnp.pad(ww, ((0, d_pad - D), (0, 0))).T.astype(compute_dtype)  # (K, Dp)

    # --- tile sizing (review: 2-8 MiB of x per tile, 256/128-row aligned) ------
    x_itemsize = jnp.dtype(compute_dtype).itemsize
    per_row = x_buffers * L * x_itemsize + (5 * d_pad + 2 * K) * 4   # x bufs + f32 temps
    tn = int((24 << 20) // max(per_row, 1))
    tn = max(256, min(4096, (tn // 256) * 256))      # 256-aligned (also 128-aligned for v5e MXU)
    if max_tile_rows is not None:
        tn = min(tn, max(8, (int(max_tile_rows) // 8) * 8))

    w_bytes = 2 * (wvu.size * wvu.dtype.itemsize + bvu.size * 4
                   + wwt.size * wwt.dtype.itemsize)   # conservatively double-buffered

    def _vmem_estimate(rows):
        return (x_buffers * rows * L * x_itemsize     # streamed x tiles
                + rows * (5 * d_pad + 2 * K) * 4      # f32 intermediates (h, gates, logits)
                + w_bytes
                + (2 * K + 2 * K * L) * 4)            # scratch + partial outputs

    while tn > 8 and _vmem_estimate(tn) > (_VMEM_CAP - (8 << 20)):
        tn = max(8, ((tn // 2) // 8) * 8)             # pathological L: shrink to fit

    if N <= tn:                                       # a single tile covers the whole bag
        tn = max(8, _round_up(N, 8))

    # --- split the N reduction into independent partial streams ----------------
    # Leading "parallel" grid axis: on v7x megacore the partial streams are sharded
    # across the 2 TensorCores (~2x HBM streaming BW); on single-TC chips it is just
    # a sequential re-init with negligible overhead.
    if num_splits is None:
        num_splits = 2 if _cdiv(N, tn) >= 4 else 1
    num_splits = max(1, int(num_splits))
    inner = max(1, _cdiv(_cdiv(N, num_splits), tn))   # tiles per split
    n_pad = num_splits * inner * tn
    mask_tail = (n_pad != N)

    x_s = x.astype(compute_dtype)
    if n_pad != N:
        x_s = jnp.pad(x_s, ((0, n_pad - N), (0, 0)))  # zero rows, masked in-kernel

    vmem_limit = int(min(max(_vmem_estimate(tn) + (4 << 20), 16 << 20), _VMEM_CAP))

    kernel = functools.partial(_attn_pool_kernel, n_valid=N, d=d_pad, tile_n=tn,
                               inner_steps=inner, mask_tail=mask_tail)

    def _pool(use_pipeline_mode):
        def _res_spec(shape):
            # Resident weights (constant index_map) are never re-fetched:
            # single-buffer them to free VMEM headroom for larger x tiles.
            if use_pipeline_mode:
                return pl.BlockSpec(shape, lambda s, j: (0, 0),
                                    pipeline_mode=pl.Buffered(1))
            return pl.BlockSpec(shape, lambda s, j: (0, 0))

        if use_pipeline_mode and x_buffers != 2:
            x_spec = pl.BlockSpec((tn, L), lambda s, j: (s * inner + j, 0),
                                  pipeline_mode=pl.Buffered(x_buffers))
        else:
            x_spec = pl.BlockSpec((tn, L), lambda s, j: (s * inner + j, 0))

        return pl.pallas_call(
            kernel,
            out_shape=(jax.ShapeDtypeStruct((num_splits, K, 1), jnp.float32),
                       jax.ShapeDtypeStruct((num_splits, K, 1), jnp.float32),
                       jax.ShapeDtypeStruct((num_splits, K, L), jnp.float32)),
            grid=(num_splits, inner),
            in_specs=[x_spec,
                      _res_spec((L, 2 * d_pad)),
                      _res_spec((1, 2 * d_pad)),
                      _res_spec((K, d_pad))],
            out_specs=(pl.BlockSpec((None, K, 1), lambda s, j: (s, 0, 0)),
                       pl.BlockSpec((None, K, 1), lambda s, j: (s, 0, 0)),
                       pl.BlockSpec((None, K, L), lambda s, j: (s, 0, 0))),
            scratch_shapes=[pltpu.VMEM((K, 1), jnp.float32),     # running max m
                            pltpu.VMEM((K, 1), jnp.float32),     # running denom s
                            pltpu.VMEM((K, L), jnp.float32)],    # running sum e_n * x_n
            compiler_params=pltpu.CompilerParams(
                dimension_semantics=("parallel", "arbitrary"),
                vmem_limit_bytes=vmem_limit),
        )(x_s, wvu, bvu, wwt)

    try:
        m_p, s_p, acc_p = _pool(True)
    except Exception:
        # Fallback for jax versions without BlockSpec.pipeline_mode / pl.Buffered.
        m_p, s_p, acc_p = _pool(False)

    # Tiny epilogue kernel: merge the per-split softmax partials, normalize, classify.
    return pl.pallas_call(
        functools.partial(_merge_classifier_kernel, num_splits=num_splits),
        out_shape=jax.ShapeDtypeStruct((K, C), jnp.float32),
    )(m_p, s_p, acc_p, wc.astype(jnp.float32), bc.astype(jnp.float32))


def _reference(x, params):
    """Pure-JAX reference mirroring the PyTorch forward (keeps bw)."""
    a_v = jnp.tanh(x @ params['wv'] + params['bv'])
    a_u = jax.nn.sigmoid(x @ params['wu'] + params['bu'])
    a = (a_v * a_u) @ params['ww'] + params['bw']          # (N, K)
    a = a.T                                                # (K, N)
    a = jax.nn.softmax(a, axis=1)
    afeat = a @ x                                          # (K, L)
    return afeat @ params['wc'] + params['bc']             # (K, C)


def make_params(key, L, D, K, num_cls):
    ks = jax.random.split(key, 8)
    scale = 0.05
    return {
        'wv': scale * jax.random.normal(ks[0], (L, D), jnp.float32),
        'bv': scale * jax.random.normal(ks[1], (1, D), jnp.float32),
        'wu': scale * jax.random.normal(ks[2], (L, D), jnp.float32),
        'bu': scale * jax.random.normal(ks[3], (1, D), jnp.float32),
        'ww': scale * jax.random.normal(ks[4], (D, K), jnp.float32),
        'bw': scale * jax.random.normal(ks[5], (1, K), jnp.float32),
        'wc': scale * jax.random.normal(ks[6], (L, num_cls), jnp.float32),
        'bc': scale * jax.random.normal(ks[7], (1, num_cls), jnp.float32),
    }


if __name__ == "__main__":
    key = jax.random.PRNGKey(0)
    kx1, kx2, kp = jax.random.split(key, 3)

    # Small shapes consistent with the module: N instances, L features, D gate width,
    # K attention heads, num_cls classes.
    L, D, K, num_cls = 64, 32, 1, 2
    params = make_params(kp, L, D, K, num_cls)

    # 1) exact-precision path (f32 streaming) vs the PyTorch-equivalent reference.
    N1 = 8
    x1 = jax.random.normal(kx1, (N1, L), jnp.float32)
    pred1 = jax.block_until_ready(
        attention_with_classifier(x1, params, compute_dtype=jnp.float32))
    ref1 = _reference(x1, params)
    assert pred1.shape == (K, num_cls)
    assert jnp.allclose(pred1, ref1, atol=1e-4, rtol=1e-4), (pred1, ref1)

    # 2) default bf16-streaming path, ragged N, forced small tiles + 2-way split:
    #    exercises the online softmax across many grid steps, the tail masking and
    #    the cross-split flash-style merge (the v7x dual-TC formulation).
    N2 = 300
    x2 = jax.random.normal(kx2, (N2, L), jnp.float32)
    pred2 = jax.block_until_ready(
        attention_with_classifier(x2, params, max_tile_rows=32, num_splits=2))
    ref2 = _reference(x2, params)
    assert pred2.shape == (K, num_cls)
    assert jnp.allclose(pred2, ref2, atol=2e-2, rtol=2e-2), (pred2, ref2)

    # 3) fully-automatic tiling / split selection on the same data.
    pred3 = jax.block_until_ready(attention_with_classifier(x2, params))
    assert jnp.allclose(pred3, ref2, atol=2e-2, rtol=2e-2), (pred3, ref2)

    print("KERNEL_OK")
</pallas_src>

<mosaic_0001>
module attributes {stable_mosaic.version = 11 : i64} {
  func.func @_attn_pool_kernel(%arg0: i32, %arg1: i32, %arg2: memref<8x64xf32, #tpu.memory_space<vmem>>, %arg3: memref<64x256xf32, #tpu.memory_space<vmem>>, %arg4: memref<1x256xf32, #tpu.memory_space<vmem>>, %arg5: memref<1x128xf32, #tpu.memory_space<vmem>>, %arg6: memref<1x1x1xf32, #tpu.memory_space<vmem>>, %arg7: memref<1x1x1xf32, #tpu.memory_space<vmem>>, %arg8: memref<1x1x64xf32, #tpu.memory_space<vmem>>, %arg9: memref<1x1xf32, #tpu.memory_space<vmem>>, %arg10: memref<1x1xf32, #tpu.memory_space<vmem>>, %arg11: memref<1x64xf32, #tpu.memory_space<vmem>>) attributes {dimension_semantics = [#tpu.dimension_semantics<parallel>, #tpu.dimension_semantics<arbitrary>], iteration_bounds = array<i64: 1, 1>, scalar_prefetch = 0 : i64, scratch_operands = 3 : i64, tpu.core_type = #tpu.core_type<tc>, window_params = [{transform_indices = @transform_0, window_bounds = array<i64: 8, 64>}, {pipeline_mode = #tpu.pipeline_mode<synchronous>, transform_indices = @transform_1, window_bounds = array<i64: 64, 256>}, {pipeline_mode = #tpu.pipeline_mode<synchronous>, transform_indices = @transform_2, window_bounds = array<i64: 1, 256>}, {pipeline_mode = #tpu.pipeline_mode<synchronous>, transform_indices = @transform_3, window_bounds = array<i64: 1, 128>}, {transform_indices = @transform_4, window_bounds = array<i64: 1, 1, 1>}, {transform_indices = @transform_5, window_bounds = array<i64: 1, 1, 1>}, {transform_indices = @transform_6, window_bounds = array<i64: 1, 1, 64>}]} {
    %c0_i32 = arith.constant 0 : i32
    %0 = arith.cmpi eq, %arg1, %c0_i32 : i32
    %1 = arith.extui %0 : i1 to i32
    %c0_i32_0 = arith.constant 0 : i32
    %2 = arith.cmpi ne, %1, %c0_i32_0 : i32
    scf.if %2 {
      %cst_27 = arith.constant -1.000000e+30 : f32
      %45 = vector.broadcast %cst_27 : f32 to vector<1x1xf32>
      %c0_28 = arith.constant 0 : index
      %c0_29 = arith.constant 0 : index
      %46 = vector.load %arg9[%c0_28, %c0_29] : memref<1x1xf32, #tpu.memory_space<vmem>>, vector<1x1xf32>
      tpu.vector_store %arg9[%c0_28, %c0_29], %45 {strides = array<i32>} : memref<1x1xf32, #tpu.memory_space<vmem>>, vector<1x1xf32>,
      %cst_30 = arith.constant 0.000000e+00 : f32
      %47 = vector.broadcast %cst_30 : f32 to vector<1x1xf32>
      %c0_31 = arith.constant 0 : index
      %c0_32 = arith.constant 0 : index
      %48 = vector.load %arg10[%c0_31, %c0_32] : memref<1x1xf32, #tpu.memory_space<vmem>>, vector<1x1xf32>
      tpu.vector_store %arg10[%c0_31, %c0_32], %47 {strides = array<i32>} : memref<1x1xf32, #tpu.memory_space<vmem>>, vector<1x1xf32>,
      %cst_33 = arith.constant 0.000000e+00 : f32
      %49 = vector.broadcast %cst_33 : f32 to vector<1x64xf32>
      %c0_34 = arith.constant 0 : index
      %c0_35 = arith.constant 0 : index
      %50 = vector.load %arg11[%c0_34, %c0_35] : memref<1x64xf32, #tpu.memory_space<vmem>>, vector<1x64xf32>
      tpu.vector_store %arg11[%c0_34, %c0_35], %49 {strides = array<i32>} : memref<1x64xf32, #tpu.memory_space<vmem>>, vector<1x64xf32>,
    } else {
    }
    %c0 = arith.constant 0 : index
    %c0_1 = arith.constant 0 : index
    %3 = vector.load %arg2[%c0, %c0_1] : memref<8x64xf32, #tpu.memory_space<vmem>>, vector<8x64xf32>
    %c0_2 = arith.constant 0 : index
    %c0_3 = arith.constant 0 : index
    %4 = vector.load %arg3[%c0_2, %c0_3] : memref<64x256xf32, #tpu.memory_space<vmem>>, vector<64x256xf32>
    %cst = arith.constant dense<0.000000e+00> : vector<8x256xf32>
    %5 = tpu.matmul %3, %4, %cst {dimension_numbers = #tpu.dot_dimension_numbers<[1], [0], [0], [1], [0, 0, 1, 1], [], []>} : vector<8x64xf32>, vector<64x256xf32>, vector<8x256xf32> -> vector<8x256xf32>
    %c0_4 = arith.constant 0 : index
    %c0_5 = arith.constant 0 : index
    %6 = vector.load %arg4[%c0_4, %c0_5] : memref<1x256xf32, #tpu.memory_space<vmem>>, vector<1x256xf32>
    %7 = vector.broadcast %6 : vector<1x256xf32> to vector<8x256xf32>
    %8 = arith.addf %5, %7 : vector<8x256xf32>
    %9 = vector.extract_strided_slice %8 {offsets = [0, 0], sizes = [8, 128], strides = [1, 1]} : vector<8x256xf32> to vector<8x128xf32>
    %10 = math.tanh %9 : vector<8x128xf32>
    %11 = vector.extract_strided_slice %8 {offsets = [0, 128], sizes = [8, 128], strides = [1, 1]} : vector<8x256xf32> to vector<8x128xf32>
    %12 = arith.negf %11 : vector<8x128xf32>
    %13 = math.exp %12 : vector<8x128xf32>
    %cst_6 = arith.constant 1.000000e+00 : f32
    %14 = vector.broadcast %cst_6 : f32 to vector<8x128xf32>
    %15 = arith.addf %14, %13 : vector<8x128xf32>
    %16 = arith.divf %14, %15 : vector<8x128xf32>
    %17 = arith.mulf %10, %16 : vector<8x128xf32>
    %c0_7 = arith.constant 0 : index
    %c0_8 = arith.constant 0 : index
    %18 = vector.load %arg5[%c0_7, %c0_8] : memref<1x128xf32, #tpu.memory_space<vmem>>, vector<1x128xf32>
    %cst_9 = arith.constant dense<0.000000e+00> : vector<1x8xf32>
    %19 = tpu.matmul %18, %17, %cst_9 {dimension_numbers = #tpu.dot_dimension_numbers<[1], [1], [0], [0], [0, 0, 1, 0], [], []>} : vector<1x128xf32>, vector<8x128xf32>, vector<1x8xf32> -> vector<1x8xf32>
    %c0_10 = arith.constant 0 : index
    %c0_11 = arith.constant 0 : index
    %20 = vector.load %arg9[%c0_10, %c0_11] : memref<1x1xf32, #tpu.memory_space<vmem>>, vector<1x1xf32>
    %cst_12 = arith.constant dense<0xFF800000> : vector<1xf32>
    %21 = vector.multi_reduction <maximumf>, %19, %cst_12 [1] : vector<1x8xf32> to vector<1xf32>
    %22 = vector.shape_cast %21 : vector<1xf32> to vector<1x1xf32>
    %23 = arith.maximumf %20, %22 : vector<1x1xf32>
    %24 = arith.subf %20, %23 : vector<1x1xf32>
    %25 = math.exp %24 : vector<1x1xf32>
    %26 = vector.broadcast %23 : vector<1x1xf32> to vector<1x8xf32>
    %27 = arith.subf %19, %26 : vector<1x8xf32>
    %28 = math.exp %27 : vector<1x8xf32>
    %c0_13 = arith.constant 0 : index
    %c0_14 = arith.constant 0 : index
    %29 = vector.load %arg10[%c0_13, %c0_14] : memref<1x1xf32, #tpu.memory_space<vmem>>, vector<1x1xf32>
    %30 = arith.mulf %25, %29 : vector<1x1xf32>
    %cst_15 = arith.constant dense<0.000000e+00> : vector<1xf32>
    %31 = vector.multi_reduction <add>, %28, %cst_15 [1] : vector<1x8xf32> to vector<1xf32>
    %32 = vector.shape_cast %31 : vector<1xf32> to vector<1x1xf32>
    %33 = arith.addf %30, %32 : vector<1x1xf32>
    %c0_16 = arith.constant 0 : index
    %c0_17 = arith.constant 0 : index
    %34 = vector.load %arg10[%c0_16, %c0_17] : memref<1x1xf32, #tpu.memory_space<vmem>>, vector<1x1xf32>
    tpu.vector_store %arg10[%c0_16, %c0_17], %33 {strides = array<i32>} : memref<1x1xf32, #tpu.memory_space<vmem>>, vector<1x1xf32>,
    %c0_18 = arith.constant 0 : index
    %c0_19 = arith.constant 0 : index
    %35 = vector.load %arg11[%c0_18, %c0_19] : memref<1x64xf32, #tpu.memory_space<vmem>>, vector<1x64xf32>
    %36 = vector.broadcast %25 : vector<1x1xf32> to vector<1x64xf32>
    %37 = arith.mulf %36, %35 : vector<1x64xf32>
    %cst_20 = arith.constant dense<0.000000e+00> : vector<1x64xf32>
    %38 = tpu.matmul %28, %3, %cst_20 {dimension_numbers = #tpu.dot_dimension_numbers<[1], [0], [0], [1], [0, 0, 1, 1], [], []>} : vector<1x8xf32>, vector<8x64xf32>, vector<1x64xf32> -> vector<1x64xf32>
    %39 = arith.addf %37, %38 : vector<1x64xf32>
    %c0_21 = arith.constant 0 : index
    %c0_22 = arith.constant 0 : index
    %40 = vector.load %arg11[%c0_21, %c0_22] : memref<1x64xf32, #tpu.memory_space<vmem>>, vector<1x64xf32>
    tpu.vector_store %arg11[%c0_21, %c0_22], %39 {strides = array<i32>} : memref<1x64xf32, #tpu.memory_space<vmem>>, vector<1x64xf32>,
    %c0_23 = arith.constant 0 : index
    %c0_24 = arith.constant 0 : index
    %41 = vector.load %arg9[%c0_23, %c0_24] : memref<1x1xf32, #tpu.memory_space<vmem>>, vector<1x1xf32>
    tpu.vector_store %arg9[%c0_23, %c0_24], %23 {strides = array<i32>} : memref<1x1xf32, #tpu.memory_space<vmem>>, vector<1x1xf32>,
    %c0_i32_25 = arith.constant 0 : i32
    %42 = arith.cmpi eq, %arg1, %c0_i32_25 : i32
    %43 = arith.extui %42 : i1 to i32
    %c0_i32_26 = arith.constant 0 : i32
    %44 = arith.cmpi ne, %43, %c0_i32_26 : i32
    scf.if %44 {
      %c0_27 = arith.constant 0 : index
      %c0_28 = arith.constant 0 : index
      %45 = vector.load %arg9[%c0_27, %c0_28] : memref<1x1xf32, #tpu.memory_space<vmem>>, vector<1x1xf32>
      %c0_29 = arith.constant 0 : index
      %c0_30 = arith.constant 0 : index
      %c0_31 = arith.constant 0 : index
      %46 = vector.load %arg6[%c0_29, %c0_30, %c0_31] : memref<1x1x1xf32, #tpu.memory_space<vmem>>, vector<1x1x1xf32>
      %47 = vector.shape_cast %46 : vector<1x1x1xf32> to vector<1x1xf32>
      %48 = vector.shape_cast %45 : vector<1x1xf32> to vector<1x1x1xf32>
      tpu.vector_store %arg6[%c0_29, %c0_30, %c0_31], %48 {strides = array<i32>} : memref<1x1x1xf32, #tpu.memory_space<vmem>>, vector<1x1x1xf32>,
      %c0_32 = arith.constant 0 : index
      %c0_33 = arith.constant 0 : index
      %49 = vector.load %arg10[%c0_32, %c0_33] : memref<1x1xf32, #tpu.memory_space<vmem>>, vector<1x1xf32>
      %c0_34 = arith.constant 0 : index
      %c0_35 = arith.constant 0 : index
      %c0_36 = arith.constant 0 : index
      %50 = vector.load %arg7[%c0_34, %c0_35, %c0_36] : memref<1x1x1xf32, #tpu.memory_space<vmem>>, vector<1x1x1xf32>
      %51 = vector.shape_cast %50 : vector<1x1x1xf32> to vector<1x1xf32>
      %52 = vector.shape_cast %49 : vector<1x1xf32> to vector<1x1x1xf32>
      tpu.vector_store %arg7[%c0_34, %c0_35, %c0_36], %52 {strides = array<i32>} : memref<1x1x1xf32, #tpu.memory_space<vmem>>, vector<1x1x1xf32>,
      %c0_37 = arith.constant 0 : index
      %c0_38 = arith.constant 0 : index
      %53 = vector.load %arg11[%c0_37, %c0_38] : memref<1x64xf32, #tpu.memory_space<vmem>>, vector<1x64xf32>
      %c0_39 = arith.constant 0 : index
      %c0_40 = arith.constant 0 : index
      %c0_41 = arith.constant 0 : index
      %54 = vector.load %arg8[%c0_39, %c0_40, %c0_41] : memref<1x1x64xf32, #tpu.memory_space<vmem>>, vector<1x1x64xf32>
      %55 = vector.shape_cast %54 : vector<1x1x64xf32> to vector<1x64xf32>
      %56 = vector.shape_cast %53 : vector<1x64xf32> to vector<1x1x64xf32>
      tpu.vector_store %arg8[%c0_39, %c0_40, %c0_41], %56 {strides = array<i32>} : memref<1x1x64xf32, #tpu.memory_space<vmem>>, vector<1x1x64xf32>,
    } else {
    }
    return
  }
  func.func @transform_0(%arg0: i32, %arg1: i32) -> (i32, i32) {
    %c1_i32 = arith.constant 1 : i32
    %0 = arith.muli %arg0, %c1_i32 : i32
    %1 = arith.addi %0, %arg1 : i32
    %c0_i32 = arith.constant 0 : i32
    %c0_i32_0 = arith.constant 0 : i32
    return %1, %c0_i32 : i32, i32
  }
  func.func @transform_1(%arg0: i32, %arg1: i32) -> (i32, i32) {
    %c0_i32 = arith.constant 0 : i32
    %c0_i32_0 = arith.constant 0 : i32
    %c0_i32_1 = arith.constant 0 : i32
    return %c0_i32, %c0_i32_0 : i32, i32
  }
  func.func @transform_2(%arg0: i32, %arg1: i32) -> (i32, i32) {
    %c0_i32 = arith.constant 0 : i32
    %c0_i32_0 = arith.constant 0 : i32
    %c0_i32_1 = arith.constant 0 : i32
    return %c0_i32, %c0_i32_0 : i32, i32
  }
  func.func @transform_3(%arg0: i32, %arg1: i32) -> (i32, i32) {
    %c0_i32 = arith.constant 0 : i32
    %c0_i32_0 = arith.constant 0 : i32
    %c0_i32_1 = arith.constant 0 : i32
    return %c0_i32, %c0_i32_0 : i32, i32
  }
  func.func @transform_4(%arg0: i32, %arg1: i32) -> (i32, i32, i32) {
    %c0_i32 = arith.constant 0 : i32
    %c0_i32_0 = arith.constant 0 : i32
    %c0_i32_1 = arith.constant 0 : i32
    return %arg0, %c0_i32, %c0_i32_0 : i32, i32, i32
  }
  func.func @transform_5(%arg0: i32, %arg1: i32) -> (i32, i32, i32) {
    %c0_i32 = arith.constant 0 : i32
    %c0_i32_0 = arith.constant 0 : i32
    %c0_i32_1 = arith.constant 0 : i32
    return %arg0, %c0_i32, %c0_i32_0 : i32, i32, i32
  }
  func.func @transform_6(%arg0: i32, %arg1: i32) -> (i32, i32, i32) {
    %c0_i32 = arith.constant 0 : i32
    %c0_i32_0 = arith.constant 0 : i32
    %c0_i32_1 = arith.constant 0 : i32
    return %arg0, %c0_i32, %c0_i32_0 : i32, i32, i32
  }
}

module attributes {stable_mosaic.version = 11 : i64} {
  func.func @_attn_pool_kernel(%arg0: i32, %arg1: i32, %arg2: memref<8x64xf32, #tpu.memory_space<vmem>>, %arg3: memref<64x256xf32, #tpu.memory_space<vmem>>, %arg4: memref<1x256xf32, #tpu.memory_space<vmem>>, %arg5: memref<1x128xf32, #tpu.memory_space<vmem>>, %arg6: memref<1x1x1xf32, #tpu.memory_space<vmem>>, %arg7: memref<1x1x1xf32, #tpu.memory_space<vmem>>, %arg8: memref<1x1x64xf32, #tpu.memory_space<vmem>>, %arg9: memref<1x1xf32, #tpu.memory_space<vmem>>, %arg10: memref<1x1xf32, #tpu.memory_space<vmem>>, %arg11: memref<1x64xf32, #tpu.memory_space<vmem>>) attributes {dimension_semantics = [#tpu.dimension_semantics<parallel>, #tpu.dimension_semantics<arbitrary>], iteration_bounds = array<i64: 1, 1>, scalar_prefetch = 0 : i64, scratch_operands = 3 : i64, tpu.core_type = #tpu.core_type<tc>, window_params = [{transform_indices = @transform_0, window_bounds = array<i64: 8, 64>}, {pipeline_mode = #tpu.pipeline_mode<synchronous>, transform_indices = @transform_1, window_bounds = array<i64: 64, 256>}, {pipeline_mode = #tpu.pipeline_mode<synchronous>, transform_indices = @transform_2, window_bounds = array<i64: 1, 256>}, {pipeline_mode = #tpu.pipeline_mode<synchronous>, transform_indices = @transform_3, window_bounds = array<i64: 1, 128>}, {transform_indices = @transform_4, window_bounds = array<i64: 1, 1, 1>}, {transform_indices = @transform_5, window_bounds = array<i64: 1, 1, 1>}, {transform_indices = @transform_6, window_bounds = array<i64: 1, 1, 64>}]} {
    %c0_i32 = arith.constant 0 : i32
    %0 = arith.cmpi eq, %arg1, %c0_i32 : i32
    %1 = arith.extui %0 : i1 to i32
    %c0_i32_0 = arith.constant 0 : i32
    %2 = arith.cmpi ne, %1, %c0_i32_0 : i32
    scf.if %2 {
      %cst_27 = arith.constant -1.000000e+30 : f32
      %45 = vector.broadcast %cst_27 : f32 to vector<1x1xf32>
      %c0_28 = arith.constant 0 : index
      %c0_29 = arith.constant 0 : index
      %46 = vector.load %arg9[%c0_28, %c0_29] : memref<1x1xf32, #tpu.memory_space<vmem>>, vector<1x1xf32>
      tpu.vector_store %arg9[%c0_28, %c0_29], %45 {strides = array<i32>} : memref<1x1xf32, #tpu.memory_space<vmem>>, vector<1x1xf32>,
      %cst_30 = arith.constant 0.000000e+00 : f32
      %47 = vector.broadcast %cst_30 : f32 to vector<1x1xf32>
      %c0_31 = arith.constant 0 : index
      %c0_32 = arith.constant 0 : index
      %48 = vector.load %arg10[%c0_31, %c0_32] : memref<1x1xf32, #tpu.memory_space<vmem>>, vector<1x1xf32>
      tpu.vector_store %arg10[%c0_31, %c0_32], %47 {strides = array<i32>} : memref<1x1xf32, #tpu.memory_space<vmem>>, vector<1x1xf32>,
      %cst_33 = arith.constant 0.000000e+00 : f32
      %49 = vector.broadcast %cst_33 : f32 to vector<1x64xf32>
      %c0_34 = arith.constant 0 : index
      %c0_35 = arith.constant 0 : index
      %50 = vector.load %arg11[%c0_34, %c0_35] : memref<1x64xf32, #tpu.memory_space<vmem>>, vector<1x64xf32>
      tpu.vector_store %arg11[%c0_34, %c0_35], %49 {strides = array<i32>} : memref<1x64xf32, #tpu.memory_space<vmem>>, vector<1x64xf32>,
    } else {
    }
    %c0 = arith.constant 0 : index
    %c0_1 = arith.constant 0 : index
    %3 = vector.load %arg2[%c0, %c0_1] : memref<8x64xf32, #tpu.memory_space<vmem>>, vector<8x64xf32>
    %c0_2 = arith.constant 0 : index
    %c0_3 = arith.constant 0 : index
    %4 = vector.load %arg3[%c0_2, %c0_3] : memref<64x256xf32, #tpu.memory_space<vmem>>, vector<64x256xf32>
    %cst = arith.constant dense<0.000000e+00> : vector<8x256xf32>
    %5 = tpu.matmul %3, %4, %cst {dimension_numbers = #tpu.dot_dimension_numbers<[1], [0], [0], [1], [0, 0, 1, 1], [], []>} : vector<8x64xf32>, vector<64x256xf32>, vector<8x256xf32> -> vector<8x256xf32>
    %c0_4 = arith.constant 0 : index
    %c0_5 = arith.constant 0 : index
    %6 = vector.load %arg4[%c0_4, %c0_5] : memref<1x256xf32, #tpu.memory_space<vmem>>, vector<1x256xf32>
    %7 = vector.broadcast %6 : vector<1x256xf32> to vector<8x256xf32>
    %8 = arith.addf %5, %7 : vector<8x256xf32>
    %9 = vector.extract_strided_slice %8 {offsets = [0, 0], sizes = [8, 128], strides = [1, 1]} : vector<8x256xf32> to vector<8x128xf32>
    %10 = math.tanh %9 : vector<8x128xf32>
    %11 = vector.extract_strided_slice %8 {offsets = [0, 128], sizes = [8, 128], strides = [1, 1]} : vector<8x256xf32> to vector<8x128xf32>
    %12 = arith.negf %11 : vector<8x128xf32>
    %13 = math.exp %12 : vector<8x128xf32>
    %cst_6 = arith.constant 1.000000e+00 : f32
    %14 = vector.broadcast %cst_6 : f32 to vector<8x128xf32>
    %15 = arith.addf %14, %13 : vector<8x128xf32>
    %16 = arith.divf %14, %15 : vector<8x128xf32>
    %17 = arith.mulf %10, %16 : vector<8x128xf32>
    %c0_7 = arith.constant 0 : index
    %c0_8 = arith.constant 0 : index
    %18 = vector.load %arg5[%c0_7, %c0_8] : memref<1x128xf32, #tpu.memory_space<vmem>>, vector<1x128xf32>
    %cst_9 = arith.constant dense<0.000000e+00> : vector<1x8xf32>
    %19 = tpu.matmul %18, %17, %cst_9 {dimension_numbers = #tpu.dot_dimension_numbers<[1], [1], [0], [0], [0, 0, 1, 0], [], []>} : vector<1x128xf32>, vector<8x128xf32>, vector<1x8xf32> -> vector<1x8xf32>
    %c0_10 = arith.constant 0 : index
    %c0_11 = arith.constant 0 : index
    %20 = vector.load %arg9[%c0_10, %c0_11] : memref<1x1xf32, #tpu.memory_space<vmem>>, vector<1x1xf32>
    %cst_12 = arith.constant dense<0xFF800000> : vector<1xf32>
    %21 = vector.multi_reduction <maximumf>, %19, %cst_12 [1] : vector<1x8xf32> to vector<1xf32>
    %22 = vector.shape_cast %21 : vector<1xf32> to vector<1x1xf32>
    %23 = arith.maximumf %20, %22 : vector<1x1xf32>
    %24 = arith.subf %20, %23 : vector<1x1xf32>
    %25 = math.exp %24 : vector<1x1xf32>
    %26 = vector.broadcast %23 : vector<1x1xf32> to vector<1x8xf32>
    %27 = arith.subf %19, %26 : vector<1x8xf32>
    %28 = math.exp %27 : vector<1x8xf32>
    %c0_13 = arith.constant 0 : index
    %c0_14 = arith.constant 0 : index
    %29 = vector.load %arg10[%c0_13, %c0_14] : memref<1x1xf32, #tpu.memory_space<vmem>>, vector<1x1xf32>
    %30 = arith.mulf %25, %29 : vector<1x1xf32>
    %cst_15 = arith.constant dense<0.000000e+00> : vector<1xf32>
    %31 = vector.multi_reduction <add>, %28, %cst_15 [1] : vector<1x8xf32> to vector<1xf32>
    %32 = vector.shape_cast %31 : vector<1xf32> to vector<1x1xf32>
    %33 = arith.addf %30, %32 : vector<1x1xf32>
    %c0_16 = arith.constant 0 : index
    %c0_17 = arith.constant 0 : index
    %34 = vector.load %arg10[%c0_16, %c0_17] : memref<1x1xf32, #tpu.memory_space<vmem>>, vector<1x1xf32>
    tpu.vector_store %arg10[%c0_16, %c0_17], %33 {strides = array<i32>} : memref<1x1xf32, #tpu.memory_space<vmem>>, vector<1x1xf32>,
    %c0_18 = arith.constant 0 : index
    %c0_19 = arith.constant 0 : index
    %35 = vector.load %arg11[%c0_18, %c0_19] : memref<1x64xf32, #tpu.memory_space<vmem>>, vector<1x64xf32>
    %36 = vector.broadcast %25 : vector<1x1xf32> to vector<1x64xf32>
    %37 = arith.mulf %36, %35 : vector<1x64xf32>
    %cst_20 = arith.constant dense<0.000000e+00> : vector<1x64xf32>
    %38 = tpu.matmul %28, %3, %cst_20 {dimension_numbers = #tpu.dot_dimension_numbers<[1], [0], [0], [1], [0, 0, 1, 1], [], []>} : vector<1x8xf32>, vector<8x64xf32>, vector<1x64xf32> -> vector<1x64xf32>
    %39 = arith.addf %37, %38 : vector<1x64xf32>
    %c0_21 = arith.constant 0 : index
    %c0_22 = arith.constant 0 : index
    %40 = vector.load %arg11[%c0_21, %c0_22] : memref<1x64xf32, #tpu.memory_space<vmem>>, vector<1x64xf32>
    tpu.vector_store %arg11[%c0_21, %c0_22], %39 {strides = array<i32>} : memref<1x64xf32, #tpu.memory_space<vmem>>, vector<1x64xf32>,
    %c0_23 = arith.constant 0 : index
    %c0_24 = arith.constant 0 : index
    %41 = vector.load %arg9[%c0_23, %c0_24] : memref<1x1xf32, #tpu.memory_space<vmem>>, vector<1x1xf32>
    tpu.vector_store %arg9[%c0_23, %c0_24], %23 {strides = array<i32>} : memref<1x1xf32, #tpu.memory_space<vmem>>, vector<1x1xf32>,
    %c0_i32_25 = arith.constant 0 : i32
    %42 = arith.cmpi eq, %arg1, %c0_i32_25 : i32
    %43 = arith.extui %42 : i1 to i32
    %c0_i32_26 = arith.constant 0 : i32
    %44 = arith.cmpi ne, %43, %c0_i32_26 : i32
    scf.if %44 {
      %c0_27 = arith.constant 0 : index
      %c0_28 = arith.constant 0 : index
      %45 = vector.load %arg9[%c0_27, %c0_28] : memref<1x1xf32, #tpu.memory_space<vmem>>, vector<1x1xf32>
      %c0_29 = arith.constant 0 : index
      %c0_30 = arith.constant 0 : index
      %c0_31 = arith.constant 0 : index
      %46 = vector.load %arg6[%c0_29, %c0_30, %c0_31] : memref<1x1x1xf32, #tpu.memory_space<vmem>>, vector<1x1x1xf32>
      %47 = vector.shape_cast %46 : vector<1x1x1xf32> to vector<1x1xf32>
      %48 = vector.shape_cast %45 : vector<1x1xf32> to vector<1x1x1xf32>
      tpu.vector_store %arg6[%c0_29, %c0_30, %c0_31], %48 {strides = array<i32>} : memref<1x1x1xf32, #tpu.memory_space<vmem>>, vector<1x1x1xf32>,
      %c0_32 = arith.constant 0 : index
      %c0_33 = arith.constant 0 : index
      %49 = vector.load %arg10[%c0_32, %c0_33] : memref<1x1xf32, #tpu.memory_space<vmem>>, vector<1x1xf32>
      %c0_34 = arith.constant 0 : index
      %c0_35 = arith.constant 0 : index
      %c0_36 = arith.constant 0 : index
      %50 = vector.load %arg7[%c0_34, %c0_35, %c0_36] : memref<1x1x1xf32, #tpu.memory_space<vmem>>, vector<1x1x1xf32>
      %51 = vector.shape_cast %50 : vector<1x1x1xf32> to vector<1x1xf32>
      %52 = vector.shape_cast %49 : vector<1x1xf32> to vector<1x1x1xf32>
      tpu.vector_store %arg7[%c0_34, %c0_35, %c0_36], %52 {strides = array<i32>} : memref<1x1x1xf32, #tpu.memory_space<vmem>>, vector<1x1x1xf32>,
      %c0_37 = arith.constant 0 : index
      %c0_38 = arith.constant 0 : index
      %53 = vector.load %arg11[%c0_37, %c0_38] : memref<1x64xf32, #tpu.memory_space<vmem>>, vector<1x64xf32>
      %c0_39 = arith.constant 0 : index
      %c0_40 = arith.constant 0 : index
      %c0_41 = arith.constant 0 : index
      %54 = vector.load %arg8[%c0_39, %c0_40, %c0_41] : memref<1x1x64xf32, #tpu.memory_space<vmem>>, vector<1x1x64xf32>
      %55 = vector.shape_cast %54 : vector<1x1x64xf32> to vector<1x64xf32>
      %56 = vector.shape_cast %53 : vector<1x64xf32> to vector<1x1x64xf32>
      tpu.vector_store %arg8[%c0_39, %c0_40, %c0_41], %56 {strides = array<i32>} : memref<1x1x64xf32, #tpu.memory_space<vmem>>, vector<1x1x64xf32>,
    } else {
    }
    return
  }
  func.func @transform_0(%arg0: i32, %arg1: i32) -> (i32, i32) {
    %c1_i32 = arith.constant 1 : i32
    %0 = arith.muli %arg0, %c1_i32 : i32
    %1 = arith.addi %0, %arg1 : i32
    %c0_i32 = arith.constant 0 : i32
    %c0_i32_0 = arith.constant 0 : i32
    return %1, %c0_i32 : i32, i32
  }
  func.func @transform_1(%arg0: i32, %arg1: i32) -> (i32, i32) {
    %c0_i32 = arith.constant 0 : i32
    %c0_i32_0 = arith.constant 0 : i32
    %c0_i32_1 = arith.constant 0 : i32
    return %c0_i32, %c0_i32_0 : i32, i32
  }
  func.func @transform_2(%arg0: i32, %arg1: i32) -> (i32, i32) {
    %c0_i32 = arith.constant 0 : i32
    %c0_i32_0 = arith.constant 0 : i32
    %c0_i32_1 = arith.constant 0 : i32
    return %c0_i32, %c0_i32_0 : i32, i32
  }
  func.func @transform_3(%arg0: i32, %arg1: i32) -> (i32, i32) {
    %c0_i32 = arith.constant 0 : i32
    %c0_i32_0 = arith.constant 0 : i32
    %c0_i32_1 = arith.constant 0 : i32
    return %c0_i32, %c0_i32_0 : i32, i32
  }
  func.func @transform_4(%arg0: i32, %arg1: i32) -> (i32, i32, i32) {
    %c0_i32 = arith.constant 0 : i32
    %c0_i32_0 = arith.constant 0 : i32
    %c0_i32_1 = arith.constant 0 : i32
    return %arg0, %c0_i32, %c0_i32_0 : i32, i32, i32
  }
  func.func @transform_5(%arg0: i32, %arg1: i32) -> (i32, i32, i32) {
    %c0_i32 = arith.constant 0 : i32
    %c0_i32_0 = arith.constant 0 : i32
    %c0_i32_1 = arith.constant 0 : i32
    return %arg0, %c0_i32, %c0_i32_0 : i32, i32, i32
  }
  func.func @transform_6(%arg0: i32, %arg1: i32) -> (i32, i32, i32) {
    %c0_i32 = arith.constant 0 : i32
    %c0_i32_0 = arith.constant 0 : i32
    %c0_i32_1 = arith.constant 0 : i32
    return %arg0, %c0_i32, %c0_i32_0 : i32, i32, i32
  }
}

</mosaic_0001>

<bundles_post_ra>
// kernel: tpu_custom_call.1
= control target key start
LH: loop header
LB: loop body
LE: loop exit
PB: predicated region body
PF: predicated region fallthrough
CT: control target
= control target key end

     0   :  { %12 = vsyncpa [#allocation6], 0  ;;  %s654_s0 = inlined_call_operand.hbm [shape: f32[8,64], index: 0, kind: input, shape index: {}]   ;;  %s655_s1 = inlined_call_operand.hbm [shape: f32[64,256], index: 1, kind: input, shape index: {}]   ;;  %s656_s2 = inlined_call_operand.vmem [shape: f32[1,256], index: 2, kind: input, shape index: {}]   ;;  %s657_s3 = inlined_call_operand.vmem [shape: f32[1,128], index: 3, kind: input, shape index: {}]   ;;  %s658_s4 = inlined_call_operand.hbm [shape: f32[1,1,1], index: 4, kind: output, shape index: {0}]   ;;  %s659_s5 = inlined_call_operand.hbm [shape: f32[1,1,1], index: 5, kind: output, shape index: {1}]   ;;  %s660_s6 = inlined_call_operand.hbm [shape: f32[1,1,64], index: 6, kind: output, shape index: {2}]  }
   0x1   :  { %13 = vsyncpa [#allocation9], 0 }
   0x2   :  { %14 = vsyncpa [#allocation7], 0 }
   0x3   :  { %15 = vsyncpa [#allocation12], 0  ;;  %s562_s21 = smov [#allocation5]   ;;  %s563_s23 = smov [#allocation8]  }
   0x4   :  { %s25_s22 = sshll.u32 %s562_s21, 4  ;;  %s34_s24 = sshll.u32 %s563_s23, 4  ;;  %s26_s22 = int_to_ptr.vmem [resolvable:$true] %s25_s22  ;;  %s35_s24 = int_to_ptr.vmem [resolvable:$true] %s34_s24 }
   0x5   :  { %s462_s25 = scalar_lea.vmem %s26_s22, 128  ;;  %p467_p1 = scmp.lt.s32.totalorder %s26_s22, %s26_s22 }
   0x6   :  { %p463_p0 = scmp.ne.s32.totalorder %s26_s22, %s462_s25  ;;  %p468_p2 = scmp.lt.s32.totalorder %s462_s25, %s462_s25 }
   0x8   :  { %p469_p3 = por %p468_p2, %p467_p1 }
   0xa   :  { %p470_p4 = pnand %p469_p3, %p463_p0 }
   0xc   :  { %473 = shalt.err (!%p470_p4)
}
   0xd   :  { %28 = dma.hbm_to_vmem [thread:$0]  %s654_s0, 128, %s26_s22, [#allocation6]  }
   0xe   :  { %s482_s28 = scalar_lea.vmem %s35_s24, 2048  ;;  %p487_p6 = scmp.lt.s32.totalorder %s35_s24, %s35_s24 }
   0xf   :  { %p483_p5 = scmp.ne.s32.totalorder %s35_s24, %s482_s28  ;;  %p488_p7 = scmp.lt.s32.totalorder %s482_s28, %s482_s28 }
  0x11   :  { %p489_p8 = por %p488_p7, %p487_p6 }
  0x13   :  { %p490_p9 = pnand %p489_p8, %p483_p5 }
  0x15   :  { %493 = shalt.err (!%p490_p9)
}
  0x16   :  { %s564_s29 = smov 256   ;;  %s565_s30 = smov 16  }
  0x17   :  { %40 = dma.hbm_to_vmem [thread:$0]  %s655_s1, 2048, %s35_s24, [#allocation9], %s564_s29, %s564_s29, %s565_s30  }
  0x18   :  { %554 = dma.done.wait [#allocation6], 128  }
  0x19   :  { %555 = vsyncadd [#allocation6], 4294967168 }
  0x1a   :  { %556 = dma.done.wait [#allocation9], 2048  }
  0x1b   :  { %557 = vsyncadd [#allocation9], 4294965248  ;;  %v566_v0 = vmov 0.0   ;;  %v77_v1 = vld [vmem:[#allocation8 + $0x78] sm:$0xff]  ;;  %v76_v2 = vld [vmem:[#allocation8 + $0x70] sm:$0xff]  ;;  %vm90_vm0 = vcmask 523264   ;;  %v80_v18 = vlaneseq }
  0x1c   :  { %158 = vmatprep.mubr.f32.mxu0 %v566_v0  ;;  %421 = vmatprep.subr.mxu1 %v566_v0  ;;  %v75_v3 = vld [vmem:[#allocation8 + $0x68] sm:$0xff]  ;;  %v74_v4 = vld [vmem:[#allocation8 + $0x60] sm:$0xff]  ;;  %v73_v5 = vld [vmem:[#allocation8 + $0x58] sm:$0xff]  ;;  %vm567_vm1 = vmmov 0   ;;  %vm56_vm2 = vcmask 0   ;;  %vm245_vm3 = vcmask 57344  }
  0x1d   :  { %110 = vmatprep.subr.mxu0 %v77_v1  ;;  %v72_v6 = vld [vmem:[#allocation8 + $0x50] sm:$0xff]  ;;  %v71_v7 = vld [vmem:[#allocation8 + $0x48] sm:$0xff]  ;;  %v70_v8 = vld [vmem:[#allocation8 + $0x40] sm:$0xff]  ;;  %423 = vmatprep.mubr.msk.f32.mxu1 %vm567_vm1, %v566_v0  ;;  %v81_v19 = vshrl.u32 %v80_v18, 7  ;;  %v568_v36 = vmov -1e+30  }
  0x1e   :  { %111 = vmatpush1.msra.mxu0 %v76_v2  ;;  %v69_v9 = vld [vmem:[#allocation8 + $0x38] sm:$0xff]  ;;  %v68_v10 = vld [vmem:[#allocation8 + $0x30] sm:$0xff]  ;;  %v67_v11 = vld [vmem:[#allocation8 + $0x28] sm:$0xff]  ;;  %57 = vst.msk [vmem:[#allocation2] sm:$0x1] %vm56_vm2, %v568_v36  ;;  %v569_v40 = vmov 0  }
  0x1f   :  { %112 = vmatprep.subr.mxu0 %v75_v3  ;;  %v66_v12 = vld [vmem:[#allocation8 + $0x20] sm:$0xff]  ;;  %v65_v13 = vld [vmem:[#allocation8 + $0x18] sm:$0xff]  ;;  %v64_v14 = vld [vmem:[#allocation8 + $0x10] sm:$0xff]  ;;  %v86_v20 = vsub.s32 1, %v81_v19  ;;  %v621_v27 = vsub.s32 0, %v81_v19  ;;  %442 = vset.pattern.permute.xlu0 %v569_v40  ;;  %vm284_vm4 = vcmask 64512  }
  0x20   :  { %113 = vmatpush1.msra.mxu0 %v74_v4  ;;  %v63_v15 = vld [vmem:[#allocation8 + $0x8] sm:$0xff]  ;;  %v62_v16 = vld [vmem:[#allocation8] sm:$0xff]  ;;  %v61_v17 = vld [vmem:[#allocation5] sm:$0xff]  ;;  %58 = vst.msk [vmem:[#allocation3] sm:$0x1] %vm56_vm2, %v566_v0  ;;  %443 = vset.pattern.permute.xlu1 %v569_v40  ;;  %vm59_vm5 = vcmask 516096  }
  0x21   :  { %114 = vmatprep.subr.mxu0 %v73_v5  ;;  %v78_v21 = vld [vmem:[%s656_s2] sm:$0x3]  ;;  %60 = vst.msk [vmem:[#allocation4] sm:$0x1] %vm59_vm5, %v566_v0 }
  0x22   :  { %115 = vmatpush1.msra.mxu0 %v72_v6  ;;  %v87_v22 = vrot.slane %v78_v21, %v86_v20  ;;  %v83_v28 = vrot.slane %v78_v21, %v621_v27  ;;  %v173_v35 = vld [vmem:[%s657_s3] sm:$0x1]  ;;  %s570_s3 = smov [#allocation10]  }
  0x23   :  { %116 = vmatprep.subr.mxu0 %v71_v7  ;;  %s377_s10 = sshll.u32 %s570_s3, 4  ;;  %s378_s10 = int_to_ptr.vmem [resolvable:$true] %s377_s10 }
  0x24   :  { %117 = vmatpush1.msra.mxu0 %v70_v8  ;;  %s494_s11 = scalar_lea.vmem %s378_s10, 16  ;;  %s498_s12 = scalar_lea.vmem %s378_s10, 32 }
  0x25   :  { %118 = vmatprep.subr.mxu0 %v69_v9  ;;  %v244_v41 = vld [vmem:[#allocation2] sm:$0x1]  ;;  %p495_p10 = scmp.ne.s32.totalorder %s378_s10, %s494_s11  ;;  %p499_p11 = scmp.lt.s32.totalorder %s378_s10, %s378_s10 }
  0x26   :  { %119 = vmatpush1.msra.mxu0 %v68_v10  ;;  %p500_p12 = scmp.lt.s32.totalorder %s498_s12, %s494_s11 }
  0x27   :  { %120 = vmatprep.subr.mxu0 %v67_v11 }
  0x28   :  { %121 = vmatpush1.msra.mxu0 %v66_v12  ;;  %p501_p13 = por %p500_p12, %p499_p11 }
  0x29   :  { %122 = vmatprep.subr.mxu0 %v65_v13 }
  0x2a   :  { %123 = vmatpush1.msra.mxu0 %v64_v14  ;;  %p502_p0 = pnand %p501_p13, %p495_p10 }
  0x2b   :  { %124 = vmatprep.subr.mxu0 %v63_v15 }
  0x2c   :  { %125 = vmatpush1.msra.mxu0 %v62_v16 }
  0x2d   :  { %414 = vmatmul.mubr.msk.f32.vlgmr.msra.gmra.mxu0 %vm90_vm0, %v61_v17 }
  0xed   :  { %v160_v23 = vpop.f32.mrf.mxu0 }
  0xee   :  { %v161_v29 = vadd.f32 %v160_v23, %v83_v28 }
  0xef   :  { %v162_v24 = vpop.f32.mrf.mxu0 }
  0xf0   :  { %v163_v25 = vadd.f32 %v162_v24, %v87_v22 }
  0xf2   :  { %v415_v26 = vmul.f32 -1.442695, %v163_v25 }
  0xf4   :  { %444 = vpow2.f32 %v415_v26 }
  0xf5   :  { %446 = vtanh.f32 %v161_v29 }
 0x101   :  { %v445_v30 = vpop.eup %444 }
 0x102   :  { %v169_v31 = vadd.f32 1.0, %v445_v30  ;;  %v447_v32 = vpop.eup %446 }
 0x104   :  { %448 = vrcp.f32 %v169_v31 }
 0x111   :  { %v449_v33 = vpop.eup %448 }
 0x112   :  { %v172_v34 = vmul.f32 %v449_v33, %v447_v32 }
 0x114   :  { %422 = vmatpush3.xpose.msra.mxu1 %v172_v34 }
 0x115   :  { %426 = vmatprep.subr.mxu1 %v566_v0 }
 0x117   :  { %424 = vmatmul.mubr.f32.vlgmr.msra.gmra.mxu1 %v173_v35 }
 0x118   :  { %427 = vmatpush3.msra.mxu1 %v61_v17  ;;  %428 = vmatprep.mubr.msk.f32.mxu1 %vm567_vm1, %v566_v0 }
 0x1d7   :  { %v240_v37 = vpop.f32.mrf.mxu1 }
 0x1d8   :  { %v246_v38 = vsel %vm245_vm3, %v240_v37, -inf }
 0x1d9   :  { %247 = vmax.xlane.f32.xlu0 %v246_v38  ;;  %v425_v39 = vpop.f32.mrf.mxu1 }
 0x262   :  { %v248_v42 = vpop.xlane.xlu0 %247 }
 0x263   :  { %v249_v43 = vmax.f32 %v244_v41, %v248_v42 }
 0x265   :  { %v250_v44 = vsub.f32 %v244_v41, %v249_v43  ;;  %361 = vst.msk [vmem:[#allocation2] sm:$0x1] %vm56_vm2, %v249_v43  ;;  %255 = vperm.xlu0 %442, %v249_v43  }
 0x267   :  { %v251_v51 = vmul.f32 1.442695, %v250_v44 }
 0x26c   :  { %v365_v45 = vld [vmem:[#allocation2] sm:$0x1] }
 0x26d   :  { %366 = vst.msk [vmem:[#allocation10] sm:$0x1] %vm56_vm2, %v365_v45 }
 0x2e0   :  { %v256_v46 = vpop.permute.xlu0 %255 }
 0x2e1   :  { %v261_v47 = vrot.slane %v256_v46, %v621_v27 }
 0x2e3   :  { %v262_v48 = vsub.f32 %v240_v37, %v261_v47 }
 0x2e5   :  { %v263_v49 = vmul.f32 1.442695, %v262_v48 }
 0x2e7   :  { %450 = vpow2.f32 %v263_v49 }
 0x2e8   :  { %452 = vpow2.f32 %v251_v51 }
 0x2f4   :  { %v451_v50 = vpop.eup %450 }
 0x2f5   :  { %429 = vmatmul.mubr.msk.f32.vlgmr.msra.gmra.mxu1 %vm284_vm4, %v451_v50  ;;  %v267_v52 = vsel %vm245_vm3, %v451_v50, 0.0  ;;  %v453_v53 = vpop.eup %452 }
 0x2f6   :  { %268 = vadd.xlane.f32.xlu1 %v267_v52 }
 0x307   :  { %276 = vperm.xlu1 %443, %v453_v53  }
 0x308   :  { %505 = shalt.err (!%p502_p0)
}
 0x309   :  { %380 = dma.vmem_to_hbm [thread:$0]  %s378_s10, 16, %s658_s4, [#allocation7]   ;;  %v265_v54 = vld [vmem:[#allocation3] sm:$0x1] }
 0x30a   :  { %v266_v55 = vmul.f32 %v453_v53, %v265_v54  ;;  %s571_s15 = smov [#allocation11]  }
 0x30b   :  { %s387_s16 = sshll.u32 %s571_s15, 4  ;;  %s388_s16 = int_to_ptr.vmem [resolvable:$true] %s387_s16 }
 0x30c   :  { %s514_s17 = scalar_lea.vmem %s388_s16, 16  ;;  %s518_s18 = scalar_lea.vmem %s388_s16, 32 }
 0x30d   :  { %p515_p1 = scmp.ne.s32.totalorder %s388_s16, %s514_s17  ;;  %p519_p2 = scmp.lt.s32.totalorder %s388_s16, %s388_s16 }
 0x30e   :  { %p520_p3 = scmp.lt.s32.totalorder %s518_s18, %s514_s17 }
 0x310   :  { %p521_p4 = por %p520_p3, %p519_p2 }
 0x312   :  { %p522_p5 = pnand %p521_p4, %p515_p1 }
 0x37f   :  { %v269_v56 = vpop.xlane.xlu1 %268 }
 0x380   :  { %v270_v57 = vadd.f32 %v269_v56, %v266_v55 }
 0x382   :  { %272 = vst.msk [vmem:[#allocation3] sm:$0x1] %vm56_vm2, %v270_v57 }
 0x389   :  { %v367_v58 = vld [vmem:[#allocation3] sm:$0x1] }
 0x38a   :  { %368 = vst.msk [vmem:[#allocation11] sm:$0x1] %vm56_vm2, %v367_v58 }
 0x38b   :  { %525 = shalt.err (!%p522_p5)
}
 0x38c   :  { %390 = dma.vmem_to_hbm [thread:$0]  %s388_s16, 16, %s659_s5, [#allocation12]   ;;  %v277_v59 = vpop.permute.xlu1 %276  ;;  %v273_v61 = vld [vmem:[#allocation4] sm:$0x1] }
 0x38d   :  { %v282_v60 = vrot.slane %v277_v59, %v621_v27  ;;  %s572_s20 = smov [#allocation13]  }
 0x38e   :  { %s397_s21 = sshll.u32 %s572_s20, 4  ;;  %s398_s21 = int_to_ptr.vmem [resolvable:$true] %s397_s21 }
 0x38f   :  { %v283_v62 = vmul.f32 %v282_v60, %v273_v61  ;;  %s534_s22 = scalar_lea.vmem %s398_s21, 16  ;;  %s538_s23 = scalar_lea.vmem %s398_s21, 32 }
 0x390   :  { %p535_p6 = scmp.ne.s32.totalorder %s398_s21, %s534_s22  ;;  %p539_p7 = scmp.lt.s32.totalorder %s398_s21, %s398_s21 }
 0x391   :  { %p540_p8 = scmp.lt.s32.totalorder %s538_s23, %s534_s22 }
 0x393   :  { %p541_p9 = por %p540_p8, %p539_p7 }
 0x395   :  { %p542_p10 = pnand %p541_p9, %p535_p6 }
 0x3b5   :  { %v354_v63 = vpop.f32.mrf.mxu1 }
 0x3b6   :  { %v358_v0 = vadd.f32 %v354_v63, %v283_v62 }
 0x3b7   :  { %v430_v1 = vpop.f32.mrf.mxu1 }
 0x3b8   :  { %360 = vst.msk [vmem:[#allocation4] sm:$0x1] %vm59_vm5, %v358_v0 }
 0x3bf   :  { %v369_v2 = vld [vmem:[#allocation4] sm:$0x1] }
 0x3c0   :  { %370 = vst.msk [vmem:[#allocation13] sm:$0x1] %vm59_vm5, %v369_v2 }
 0x3c1   :  { %545 = shalt.err (!%p542_p10)
}
 0x3c2   :  { %400 = dma.vmem_to_hbm [thread:$0]  %s398_s21, 16, %s660_s6, [#allocation12]  }
 0x3c3   :  { %558 = dma.done.wait [#allocation7], 16  }
 0x3c4   :  { %559 = vsyncadd [#allocation7], 4294967280 }
 0x3c5   :  { %560 = dma.done.wait [#allocation12], 32  }
 0x3c6   :  { %561 = vsyncadd [#allocation12], 4294967264 }
 0x3c7   :  { %410 = vsyncpa [#allocation6], 1 }
 0x3c8   :  { %411 = vsyncpa [#allocation9], 1 }
 0x3c9   :  { %412 = vsyncpa [#allocation7], 1 }
 0x3ca   :  { %413 = vsyncpa [#allocation12], 1 }

// kernel: tpu_custom_call.1
= control target key start
LH: loop header
LB: loop body
LE: loop exit
PB: predicated region body
PF: predicated region fallthrough
CT: control target
= control target key end

     0   :  { %12 = vsyncpa [#allocation6], 0  ;;  %s654_s0 = inlined_call_operand.hbm [shape: f32[8,64], index: 0, kind: input, shape index: {}]   ;;  %s655_s1 = inlined_call_operand.hbm [shape: f32[64,256], index: 1, kind: input, shape index: {}]   ;;  %s656_s2 = inlined_call_operand.vmem [shape: f32[1,256], index: 2, kind: input, shape index: {}]   ;;  %s657_s3 = inlined_call_operand.vmem [shape: f32[1,128], index: 3, kind: input, shape index: {}]   ;;  %s658_s4 = inlined_call_operand.hbm [shape: f32[1,1,1], index: 4, kind: output, shape index: {0}]   ;;  %s659_s5 = inlined_call_operand.hbm [shape: f32[1,1,1], index: 5, kind: output, shape index: {1}]   ;;  %s660_s6 = inlined_call_operand.hbm [shape: f32[1,1,64], index: 6, kind: output, shape index: {2}]  }
   0x1   :  { %13 = vsyncpa [#allocation9], 0 }
   0x2   :  { %14 = vsyncpa [#allocation7], 0 }
   0x3   :  { %15 = vsyncpa [#allocation12], 0  ;;  %s562_s21 = smov [#allocation5]   ;;  %s563_s23 = smov [#allocation8]  }
   0x4   :  { %s25_s22 = sshll.u32 %s562_s21, 4  ;;  %s34_s24 = sshll.u32 %s563_s23, 4  ;;  %s26_s22 = int_to_ptr.vmem [resolvable:$true] %s25_s22  ;;  %s35_s24 = int_to_ptr.vmem [resolvable:$true] %s34_s24 }
   0x5   :  { %s462_s25 = scalar_lea.vmem %s26_s22, 128  ;;  %p467_p1 = scmp.lt.s32.totalorder %s26_s22, %s26_s22 }
   0x6   :  { %p463_p0 = scmp.ne.s32.totalorder %s26_s22, %s462_s25  ;;  %p468_p2 = scmp.lt.s32.totalorder %s462_s25, %s462_s25 }
   0x8   :  { %p469_p3 = por %p468_p2, %p467_p1 }
   0xa   :  { %p470_p4 = pnand %p469_p3, %p463_p0 }
   0xc   :  { %473 = shalt.err (!%p470_p4)
}
   0xd   :  { %28 = dma.hbm_to_vmem [thread:$0]  %s654_s0, 128, %s26_s22, [#allocation6]  }
   0xe   :  { %s482_s28 = scalar_lea.vmem %s35_s24, 2048  ;;  %p487_p6 = scmp.lt.s32.totalorder %s35_s24, %s35_s24 }
   0xf   :  { %p483_p5 = scmp.ne.s32.totalorder %s35_s24, %s482_s28  ;;  %p488_p7 = scmp.lt.s32.totalorder %s482_s28, %s482_s28 }
  0x11   :  { %p489_p8 = por %p488_p7, %p487_p6 }
  0x13   :  { %p490_p9 = pnand %p489_p8, %p483_p5 }
  0x15   :  { %493 = shalt.err (!%p490_p9)
}
  0x16   :  { %s564_s29 = smov 256   ;;  %s565_s30 = smov 16  }
  0x17   :  { %40 = dma.hbm_to_vmem [thread:$0]  %s655_s1, 2048, %s35_s24, [#allocation9], %s564_s29, %s564_s29, %s565_s30  }
  0x18   :  { %554 = dma.done.wait [#allocation6], 128  }
  0x19   :  { %555 = vsyncadd [#allocation6], 4294967168 }
  0x1a   :  { %556 = dma.done.wait [#allocation9], 2048  }
  0x1b   :  { %557 = vsyncadd [#allocation9], 4294965248  ;;  %v566_v0 = vmov 0.0   ;;  %v77_v1 = vld [vmem:[#allocation8 + $0x78] sm:$0xff]  ;;  %v76_v2 = vld [vmem:[#allocation8 + $0x70] sm:$0xff]  ;;  %vm90_vm0 = vcmask 523264   ;;  %v80_v18 = vlaneseq }
  0x1c   :  { %158 = vmatprep.mubr.f32.mxu0 %v566_v0  ;;  %421 = vmatprep.subr.mxu1 %v566_v0  ;;  %v75_v3 = vld [vmem:[#allocation8 + $0x68] sm:$0xff]  ;;  %v74_v4 = vld [vmem:[#allocation8 + $0x60] sm:$0xff]  ;;  %v73_v5 = vld [vmem:[#allocation8 + $0x58] sm:$0xff]  ;;  %vm567_vm1 = vmmov 0   ;;  %vm56_vm2 = vcmask 0   ;;  %vm245_vm3 = vcmask 57344  }
  0x1d   :  { %110 = vmatprep.subr.mxu0 %v77_v1  ;;  %v72_v6 = vld [vmem:[#allocation8 + $0x50] sm:$0xff]  ;;  %v71_v7 = vld [vmem:[#allocation8 + $0x48] sm:$0xff]  ;;  %v70_v8 = vld [vmem:[#allocation8 + $0x40] sm:$0xff]  ;;  %423 = vmatprep.mubr.msk.f32.mxu1 %vm567_vm1, %v566_v0  ;;  %v81_v19 = vshrl.u32 %v80_v18, 7  ;;  %v568_v36 = vmov -1e+30  }
  0x1e   :  { %111 = vmatpush1.msra.mxu0 %v76_v2  ;;  %v69_v9 = vld [vmem:[#allocation8 + $0x38] sm:$0xff]  ;;  %v68_v10 = vld [vmem:[#allocation8 + $0x30] sm:$0xff]  ;;  %v67_v11 = vld [vmem:[#allocation8 + $0x28] sm:$0xff]  ;;  %57 = vst.msk [vmem:[#allocation2] sm:$0x1] %vm56_vm2, %v568_v36  ;;  %v569_v40 = vmov 0  }
  0x1f   :  { %112 = vmatprep.subr.mxu0 %v75_v3  ;;  %v66_v12 = vld [vmem:[#allocation8 + $0x20] sm:$0xff]  ;;  %v65_v13 = vld [vmem:[#allocation8 + $0x18] sm:$0xff]  ;;  %v64_v14 = vld [vmem:[#allocation8 + $0x10] sm:$0xff]  ;;  %v86_v20 = vsub.s32 1, %v81_v19  ;;  %v621_v27 = vsub.s32 0, %v81_v19  ;;  %442 = vset.pattern.permute.xlu0 %v569_v40  ;;  %vm284_vm4 = vcmask 64512  }
  0x20   :  { %113 = vmatpush1.msra.mxu0 %v74_v4  ;;  %v63_v15 = vld [vmem:[#allocation8 + $0x8] sm:$0xff]  ;;  %v62_v16 = vld [vmem:[#allocation8] sm:$0xff]  ;;  %v61_v17 = vld [vmem:[#allocation5] sm:$0xff]  ;;  %58 = vst.msk [vmem:[#allocation3] sm:$0x1] %vm56_vm2, %v566_v0  ;;  %443 = vset.pattern.permute.xlu1 %v569_v40  ;;  %vm59_vm5 = vcmask 516096  }
  0x21   :  { %114 = vmatprep.subr.mxu0 %v73_v5  ;;  %v78_v21 = vld [vmem:[%s656_s2] sm:$0x3]  ;;  %60 = vst.msk [vmem:[#allocation4] sm:$0x1] %vm59_vm5, %v566_v0 }
  0x22   :  { %115 = vmatpush1.msra.mxu0 %v72_v6  ;;  %v87_v22 = vrot.slane %v78_v21, %v86_v20  ;;  %v83_v28 = vrot.slane %v78_v21, %v621_v27  ;;  %v173_v35 = vld [vmem:[%s657_s3] sm:$0x1]  ;;  %s570_s3 = smov [#allocation10]  }
  0x23   :  { %116 = vmatprep.subr.mxu0 %v71_v7  ;;  %s377_s10 = sshll.u32 %s570_s3, 4  ;;  %s378_s10 = int_to_ptr.vmem [resolvable:$true] %s377_s10 }
  0x24   :  { %117 = vmatpush1.msra.mxu0 %v70_v8  ;;  %s494_s11 = scalar_lea.vmem %s378_s10, 16  ;;  %s498_s12 = scalar_lea.vmem %s378_s10, 32 }
  0x25   :  { %118 = vmatprep.subr.mxu0 %v69_v9  ;;  %v244_v41 = vld [vmem:[#allocation2] sm:$0x1]  ;;  %p495_p10 = scmp.ne.s32.totalorder %s378_s10, %s494_s11  ;;  %p499_p11 = scmp.lt.s32.totalorder %s378_s10, %s378_s10 }
  0x26   :  { %119 = vmatpush1.msra.mxu0 %v68_v10  ;;  %p500_p12 = scmp.lt.s32.totalorder %s498_s12, %s494_s11 }
  0x27   :  { %120 = vmatprep.subr.mxu0 %v67_v11 }
  0x28   :  { %121 = vmatpush1.msra.mxu0 %v66_v12  ;;  %p501_p13 = por %p500_p12, %p499_p11 }
  0x29   :  { %122 = vmatprep.subr.mxu0 %v65_v13 }
  0x2a   :  { %123 = vmatpush1.msra.mxu0 %v64_v14  ;;  %p502_p0 = pnand %p501_p13, %p495_p10 }
  0x2b   :  { %124 = vmatprep.subr.mxu0 %v63_v15 }
  0x2c   :  { %125 = vmatpush1.msra.mxu0 %v62_v16 }
  0x2d   :  { %414 = vmatmul.mubr.msk.f32.vlgmr.msra.gmra.mxu0 %vm90_vm0, %v61_v17 }
  0xed   :  { %v160_v23 = vpop.f32.mrf.mxu0 }
  0xee   :  { %v161_v29 = vadd.f32 %v160_v23, %v83_v28 }
  0xef   :  { %v162_v24 = vpop.f32.mrf.mxu0 }
  0xf0   :  { %v163_v25 = vadd.f32 %v162_v24, %v87_v22 }
  0xf2   :  { %v415_v26 = vmul.f32 -1.442695, %v163_v25 }
  0xf4   :  { %444 = vpow2.f32 %v415_v26 }
  0xf5   :  { %446 = vtanh.f32 %v161_v29 }
 0x101   :  { %v445_v30 = vpop.eup %444 }
 0x102   :  { %v169_v31 = vadd.f32 1.0, %v445_v30  ;;  %v447_v32 = vpop.eup %446 }
 0x104   :  { %448 = vrcp.f32 %v169_v31 }
 0x111   :  { %v449_v33 = vpop.eup %448 }
 0x112   :  { %v172_v34 = vmul.f32 %v449_v33, %v447_v32 }
 0x114   :  { %422 = vmatpush3.xpose.msra.mxu1 %v172_v34 }
 0x115   :  { %426 = vmatprep.subr.mxu1 %v566_v0 }
 0x117   :  { %424 = vmatmul.mubr.f32.vlgmr.msra.gmra.mxu1 %v173_v35 }
 0x118   :  { %427 = vmatpush3.msra.mxu1 %v61_v17  ;;  %428 = vmatprep.mubr.msk.f32.mxu1 %vm567_vm1, %v566_v0 }
 0x1d7   :  { %v240_v37 = vpop.f32.mrf.mxu1 }
 0x1d8   :  { %v246_v38 = vsel %vm245_vm3, %v240_v37, -inf }
 0x1d9   :  { %247 = vmax.xlane.f32.xlu0 %v246_v38  ;;  %v425_v39 = vpop.f32.mrf.mxu1 }
 0x262   :  { %v248_v42 = vpop.xlane.xlu0 %247 }
 0x263   :  { %v249_v43 = vmax.f32 %v244_v41, %v248_v42 }
 0x265   :  { %v250_v44 = vsub.f32 %v244_v41, %v249_v43  ;;  %361 = vst.msk [vmem:[#allocation2] sm:$0x1] %vm56_vm2, %v249_v43  ;;  %255 = vperm.xlu0 %442, %v249_v43  }
 0x267   :  { %v251_v51 = vmul.f32 1.442695, %v250_v44 }
 0x26c   :  { %v365_v45 = vld [vmem:[#allocation2] sm:$0x1] }
 0x26d   :  { %366 = vst.msk [vmem:[#allocation10] sm:$0x1] %vm56_vm2, %v365_v45 }
 0x2e0   :  { %v256_v46 = vpop.permute.xlu0 %255 }
 0x2e1   :  { %v261_v47 = vrot.slane %v256_v46, %v621_v27 }
 0x2e3   :  { %v262_v48 = vsub.f32 %v240_v37, %v261_v47 }
 0x2e5   :  { %v263_v49 = vmul.f32 1.442695, %v262_v48 }
 0x2e7   :  { %450 = vpow2.f32 %v263_v49 }
 0x2e8   :  { %452 = vpow2.f32 %v251_v51 }
 0x2f4   :  { %v451_v50 = vpop.eup %450 }
 0x2f5   :  { %429 = vmatmul.mubr.msk.f32.vlgmr.msra.gmra.mxu1 %vm284_vm4, %v451_v50  ;;  %v267_v52 = vsel %vm245_vm3, %v451_v50, 0.0  ;;  %v453_v53 = vpop.eup %452 }
 0x2f6   :  { %268 = vadd.xlane.f32.xlu1 %v267_v52 }
 0x307   :  { %276 = vperm.xlu1 %443, %v453_v53  }
 0x308   :  { %505 = shalt.err (!%p502_p0)
}
 0x309   :  { %380 = dma.vmem_to_hbm [thread:$0]  %s378_s10, 16, %s658_s4, [#allocation7]   ;;  %v265_v54 = vld [vmem:[#allocation3] sm:$0x1] }
 0x30a   :  { %v266_v55 = vmul.f32 %v453_v53, %v265_v54  ;;  %s571_s15 = smov [#allocation11]  }
 0x30b   :  { %s387_s16 = sshll.u32 %s571_s15, 4  ;;  %s388_s16 = int_to_ptr.vmem [resolvable:$true] %s387_s16 }
 0x30c   :  { %s514_s17 = scalar_lea.vmem %s388_s16, 16  ;;  %s518_s18 = scalar_lea.vmem %s388_s16, 32 }
 0x30d   :  { %p515_p1 = scmp.ne.s32.totalorder %s388_s16, %s514_s17  ;;  %p519_p2 = scmp.lt.s32.totalorder %s388_s16, %s388_s16 }
 0x30e   :  { %p520_p3 = scmp.lt.s32.totalorder %s518_s18, %s514_s17 }
 0x310   :  { %p521_p4 = por %p520_p3, %p519_p2 }
 0x312   :  { %p522_p5 = pnand %p521_p4, %p515_p1 }
 0x37f   :  { %v269_v56 = vpop.xlane.xlu1 %268 }
 0x380   :  { %v270_v57 = vadd.f32 %v269_v56, %v266_v55 }
 0x382   :  { %272 = vst.msk [vmem:[#allocation3] sm:$0x1] %vm56_vm2, %v270_v57 }
 0x389   :  { %v367_v58 = vld [vmem:[#allocation3] sm:$0x1] }
 0x38a   :  { %368 = vst.msk [vmem:[#allocation11] sm:$0x1] %vm56_vm2, %v367_v58 }
 0x38b   :  { %525 = shalt.err (!%p522_p5)
}
 0x38c   :  { %390 = dma.vmem_to_hbm [thread:$0]  %s388_s16, 16, %s659_s5, [#allocation12]   ;;  %v277_v59 = vpop.permute.xlu1 %276  ;;  %v273_v61 = vld [vmem:[#allocation4] sm:$0x1] }
 0x38d   :  { %v282_v60 = vrot.slane %v277_v59, %v621_v27  ;;  %s572_s20 = smov [#allocation13]  }
 0x38e   :  { %s397_s21 = sshll.u32 %s572_s20, 4  ;;  %s398_s21 = int_to_ptr.vmem [resolvable:$true] %s397_s21 }
 0x38f   :  { %v283_v62 = vmul.f32 %v282_v60, %v273_v61  ;;  %s534_s22 = scalar_lea.vmem %s398_s21, 16  ;;  %s538_s23 = scalar_lea.vmem %s398_s21, 32 }
 0x390   :  { %p535_p6 = scmp.ne.s32.totalorder %s398_s21, %s534_s22  ;;  %p539_p7 = scmp.lt.s32.totalorder %s398_s21, %s398_s21 }
 0x391   :  { %p540_p8 = scmp.lt.s32.totalorder %s538_s23, %s534_s22 }
 0x393   :  { %p541_p9 = por %p540_p8, %p539_p7 }
 0x395   :  { %p542_p10 = pnand %p541_p9, %p535_p6 }
 0x3b5   :  { %v354_v63 = vpop.f32.mrf.mxu1 }
 0x3b6   :  { %v358_v0 = vadd.f32 %v354_v63, %v283_v62 }
 0x3b7   :  { %v430_v1 = vpop.f32.mrf.mxu1 }
 0x3b8   :  { %360 = vst.msk [vmem:[#allocation4] sm:$0x1] %vm59_vm5, %v358_v0 }
 0x3bf   :  { %v369_v2 = vld [vmem:[#allocation4] sm:$0x1] }
 0x3c0   :  { %370 = vst.msk [vmem:[#allocation13] sm:$0x1] %vm59_vm5, %v369_v2 }
 0x3c1   :  { %545 = shalt.err (!%p542_p10)
}
 0x3c2   :  { %400 = dma.vmem_to_hbm [thread:$0]  %s398_s21, 16, %s660_s6, [#allocation12]  }
 0x3c3   :  { %558 = dma.done.wait [#allocation7], 16  }
 0x3c4   :  { %559 = vsyncadd [#allocation7], 4294967280 }
 0x3c5   :  { %560 = dma.done.wait [#allocation12], 32  }
 0x3c6   :  { %561 = vsyncadd [#allocation12], 4294967264 }
 0x3c7   :  { %410 = vsyncpa [#allocation6], 1 }
 0x3c8   :  { %411 = vsyncpa [#allocation9], 1 }
 0x3c9   :  { %412 = vsyncpa [#allocation7], 1 }
 0x3ca   :  { %413 = vsyncpa [#allocation12], 1 }

</bundles_post_ra>
